<compile_context>
chip_gen: v7x
topology: tpu7x:2x2x1
jax: 0.10.0
libtpu: 0.0.40
codegen_flags: <defaults>
</compile_context>

<pallas_src>
import functools

import jax
import jax.numpy as jnp
from jax.experimental import pallas as pl
from jax.experimental.pallas import tpu as pltpu

_LANES = 128
_TARGET_BLOCK_BYTES = 1 << 20  # aim for ~1 MiB of output per grid step


def _bcast_kernel(c_ref, o_ref):
    # c_ref: (1, ...) constant slab, VMEM-resident across all grid steps
    #        (same block index every step -> fetched from HBM exactly once).
    # o_ref: (TB, ...) output block covering TB consecutive batch elements.
    o_ref[...] = jnp.broadcast_to(c_ref[...], o_ref.shape)


def _choose_batch_block(batch_size, bytes_per_elem):
    """Pick TB so a grid step writes ~1 MiB, keeps >=2 steps, divides batch."""
    tb = max(1, _TARGET_BLOCK_BYTES // max(1, bytes_per_elem))
    if batch_size >= 2:
        # keep at least 2 grid steps so both v7x TensorCores get work
        tb = min(tb, batch_size // 2)
    tb = max(1, min(tb, batch_size))
    while batch_size % tb:  # largest divisor <= tb -> no ragged last block
        tb -= 1
    return tb


def _constant_input3_impl(const, batch_size):
    _, C, S1, S2, S3 = const.shape
    total = C * S1 * S2 * S3
    itemsize = jnp.dtype(const.dtype).itemsize

    # ---- lane-dense layout, no pad / un-pad round trip -------------------
    if total % _LANES == 0:
        # (1, R, 128): full unmasked lane stores (sublanes also full when
        # R % 8 == 0, e.g. channel=512, size=4 -> R=256).
        R = total // _LANES
        slab = const.reshape(1, R, _LANES)
    else:
        # Ragged lane tail handled by masked stores inside the kernel (block
        # last two dims equal the full array dims) -- never by an XLA slice.
        slab = const.reshape(1, 1, total)

    slab_bytes = total * itemsize
    tb = _choose_batch_block(batch_size, slab_bytes)
    grid = (batch_size // tb,)

    out_shape = (batch_size,) + slab.shape[1:]
    out_block = (tb,) + slab.shape[1:]
    zeros = (0,) * (slab.ndim - 1)

    in_spec = pl.BlockSpec(slab.shape, lambda b: (0,) + zeros)
    out_spec = pl.BlockSpec(out_block, lambda b: (b,) + zeros)

    # VMEM: double-buffered output block + resident constant, with 2x margin;
    # capped at 32 MiB so it is safe on v7x's smaller scoped VMEM.
    need = 2 * tb * slab_bytes + 2 * slab_bytes
    vmem_limit = int(min(max(2 * need, 4 << 20), 32 << 20))

    out = pl.pallas_call(
        _bcast_kernel,
        out_shape=jax.ShapeDtypeStruct(out_shape, const.dtype),
        grid=grid,
        in_specs=[in_spec],
        out_specs=out_spec,
        compiler_params=pltpu.CompilerParams(
            dimension_semantics=("parallel",),
            vmem_limit_bytes=vmem_limit,
        ),
        cost_estimate=pl.CostEstimate(
            flops=0,
            transcendentals=0,
            bytes_accessed=slab_bytes + batch_size * slab_bytes,
        ),
    )(slab)

    # contiguous reshape only -> no extra HBM copy
    return out.reshape(batch_size, C, S1, S2, S3)


@functools.partial(jax.custom_vjp, nondiff_argnums=(1,))
def constant_input3(const, batch_size):
    """ConstantInput3.forward: repeat the learned constant along batch."""
    return _constant_input3_impl(const, batch_size)


def _ci3_fwd(const, batch_size):
    return _constant_input3_impl(const, batch_size), None


def _ci3_bwd(batch_size, _, g):
    # grad of a batch-repeat w.r.t. the constant = sum of cotangent over batch
    return (jnp.sum(g, axis=0, keepdims=True),)


constant_input3.defvjp(_ci3_fwd, _ci3_bwd)


if __name__ == "__main__":
    # ConstantInput3(channel=4, size=4); forward(batch_size=2)
    channel, size = 4, 4
    batch_size = 2

    key = jax.random.PRNGKey(0)
    const = jax.random.normal(
        key, (1, channel, size, size, size), dtype=jnp.float32
    )

    out = constant_input3(const, batch_size)
    out = jax.block_until_ready(out)

    # reference: torch's .repeat(batch_size, 1, 1, 1, 1) == batch broadcast
    ref = jnp.broadcast_to(const, (batch_size, channel, size, size, size))

    assert out.shape == (batch_size, channel, size, size, size)
    assert out.dtype == const.dtype
    assert jnp.array_equal(out, ref)

    print("KERNEL_OK")
</pallas_src>

<mosaic_0001>
module attributes {stable_mosaic.version = 11 : i64} {
  func.func @_bcast_kernel(%arg0: i32, %arg1: memref<1x2x128xf32, #tpu.memory_space<vmem>>, %arg2: memref<1x2x128xf32, #tpu.memory_space<vmem>>) attributes {dimension_semantics = [#tpu.dimension_semantics<parallel>], iteration_bounds = array<i64: 2>, scalar_prefetch = 0 : i64, scratch_operands = 0 : i64, tpu.core_type = #tpu.core_type<tc>, window_params = [{pipeline_mode = #tpu.pipeline_mode<synchronous>, transform_indices = @transform_0, window_bounds = array<i64: 1, 2, 128>}, {transform_indices = @transform_1, window_bounds = array<i64: 1, 2, 128>}]} {
    %c0 = arith.constant 0 : index
    %c0_0 = arith.constant 0 : index
    %c0_1 = arith.constant 0 : index
    %0 = vector.load %arg1[%c0, %c0_0, %c0_1] : memref<1x2x128xf32, #tpu.memory_space<vmem>>, vector<1x2x128xf32>
    %c0_2 = arith.constant 0 : index
    %c0_3 = arith.constant 0 : index
    %c0_4 = arith.constant 0 : index
    %1 = vector.load %arg2[%c0_2, %c0_3, %c0_4] : memref<1x2x128xf32, #tpu.memory_space<vmem>>, vector<1x2x128xf32>
    tpu.vector_store %arg2[%c0_2, %c0_3, %c0_4], %0 {strides = array<i32>} : memref<1x2x128xf32, #tpu.memory_space<vmem>>, vector<1x2x128xf32>,
    return
  }
  func.func @transform_0(%arg0: i32) -> (i32, i32, i32) {
    %c0_i32 = arith.constant 0 : i32
    %c0_i32_0 = arith.constant 0 : i32
    %c0_i32_1 = arith.constant 0 : i32
    %c0_i32_2 = arith.constant 0 : i32
    return %c0_i32, %c0_i32_0, %c0_i32_1 : i32, i32, i32
  }
  func.func @transform_1(%arg0: i32) -> (i32, i32, i32) {
    %c0_i32 = arith.constant 0 : i32
    %c0_i32_0 = arith.constant 0 : i32
    %c0_i32_1 = arith.constant 0 : i32
    return %arg0, %c0_i32, %c0_i32_0 : i32, i32, i32
  }
}

</mosaic_0001>

<bundles_post_ra>
// kernel: tpu_custom_call.1
= control target key start
LH: loop header
LB: loop body
LE: loop exit
PB: predicated region body
PF: predicated region fallthrough
CT: control target
= control target key end

     0   :  { %6 = vsyncpa [#allocation3], 0  ;;  %s481_s0 = inlined_call_operand.hbm [shape: f32[1,2,128], index: 0, kind: input, shape index: {}]   ;;  %s482_s1 = inlined_call_operand.hbm [shape: f32[2,2,128], index: 1, kind: output, shape index: {}]  }
   0x1   :  { %7 = vsyncpa [#allocation4], 0 }
   0x2   :  { %9 = vsyncpa [#allocation4 + $0x1], 0  ;;  %s351_s6 = smov 0   ;;  %s353_s7 = smov 0  }
   0x3   :  { %s355_s8 = smov 0   ;;  %s357_s9 = smov 0  }
   0x4 LB: > { %s372_s10 = sadd.s32 4294967295, %s337_s9   ;;  %s183_s11 = sadd.s32 4294967294, %s337_s9   ;;  %s337_s9 = sphi %s357_s9, %s498_s9   ;;  %s333_s8 = sphi %s355_s8, %s497_s8   ;;  %s329_s7 = sphi %s353_s7, %s496_s7   ;;  %s325_s6 = sphi %s351_s6, %s495_s6  }
   0x5   : > { %s376_s12 = sadd.s32 1, %s337_s9   ;;  %s43_s13 = sadd.s32 1, %s333_s8 }
   0x6   : > { %s40_s14 = ssub.s32 %s337_s9, %s376_s12  ;;  %p53_p0 = scmp.ne.s32.totalorder %s333_s8, %s329_s7 }
   0x7   : > { %p41_p1 = scmp.eq.s32.totalorder %s40_s14, 0  ;;  %p54_p2 = scmp.eq.s32.totalorder %s372_s10, 1 }
   0x8   : > { %p59_p3 = scmp.ne.s32.totalorder %s329_s7, %s325_s6  ;;  %p60_p4 = scmp.eq.s32.totalorder %s183_s11, 1 }
   0x9   : > { %s387_s15 = scalar_select %p41_p1, %s333_s8, %s43_s13  }
   0xa   : > { %p389_p5 = por %p54_p2, %p53_p0  ;;  %p393_p6 = por %p60_p4, %p59_p3 }
   0xb   : > { %p184_p7 = scmp.ge.s32.totalorder %s337_s9, 1  ;;  %p67_p8 = scmp.lt.s32.totalorder %s337_s9, 3 }
   0xc   : > { %s486_s16 = scalar_select %p389_p5, 1, 0 }
   0xd   : > { %s487_s17 = scalar_select %p393_p6, 1, 0 }
   0xe   : > { %p483_p9 = scmp.eq.s32.totalorder %s372_s10, 0  ;;  %p400_p10 = pnand %p184_p7, %p67_p8 }
   0xf   : > { %s339_s19 = smov [#allocation2]   ;;  %s243_s24 = scalar_lea.hbm %s481_s0, 32 }
  0x10   : > { %s488_s18 = scalar_select %p400_p10, 1, 0 }
  0x11   : > { %s80_s20 = sshll.u32 %s339_s19, 4  ;;  %p199_p11 = pneg %p400_p10  ;;  %s81_s20 = int_to_ptr.vmem [resolvable:$true] %s80_s20 }
  0x12   : > { %p244_p13 = scmp.ne.s32.totalorder %s481_s0, %s243_s24  ;;  %p250_p3 = scmp.lt.u32.totalorder %s243_s24, %s481_s0 }
  0x13   : > { %p408_p12 = pnand %p483_p9, %p199_p11 }
  0x15   : > { %p245_p0 = pneg %p408_p12 }
  0x17   : > { %p246_p1 = pnand %p245_p0, %p244_p13 }
  0x19   : > { %p247_p2 = pneg %p246_p1 }
  0x1b   : > { %p252_p4 = pnand %p250_p3, %p247_p2 }
  0x1d   : > { %255 = shalt.err (!%p252_p4)
}
  0x1e   : > { %s256_s29 = scalar_lea.vmem %s81_s20, 32  ;;  %p264_p9 = scmp.lt.s32.totalorder %s81_s20, %s81_s20 }
  0x1f   : > { %p257_p7 = scmp.ne.s32.totalorder %s81_s20, %s256_s29  ;;  %p265_p6 = scmp.lt.s32.totalorder %s256_s29, %s256_s29 }
  0x21   : > { %p259_p8 = pnand %p257_p7, %p245_p0  ;;  %p266_p5 = por %p265_p6, %p264_p9 }
  0x23   : > { %p260_p11 = pneg %p259_p8 }
  0x25   : > { %p267_p10 = pnand %p266_p5, %p260_p11 }
  0x27   : > { %270 = shalt.err (!%p267_p10)
}
  0x28   : > { %202 = dma.hbm_to_vmem [thread:$0]  (!%p408_p12), %s481_s0, 32, %s81_s20, [#allocation3]  }
  0x29   : > { %p490_p13 = scmp.ne.s32.totalorder %s488_s18, 0 }
  0x2a   : > { %p491_p1 = scmp.eq.s32.totalorder (!%p490_p13), %s372_s10, 0 }
  0x2b   : > { %93 = sbr.rel (%p490_p13) target bundleno = 77 (0x4d), region = 24 }
  0x32   : > { %316 = dma.done.wait (%p491_p1), [#allocation3], 32   ;;  %p492_p0 = pmov %p491_p1 }
  0x33   : > { %s105_s3 = sand.u32 1, %s329_s7   ;;  %s190_s13 = sshll.u32 %s372_s10, 5  ;;  %v108_v0 = vld [vmem:[#allocation2] sm:$0x3] }
  0x34   : > { %318 = vsyncadd (%p492_p0), [#allocation3], 4294967264  ;;  %s188_s4 = sshll.u32 %s105_s3, 1  ;;  %s441_s18 = scalar_lea.hbm %s482_s1, %s190_s13 }
  0x35   : > { %s107_s5 = scalar_lea.vmem [#allocation5], %s188_s4  ;;  %s111_s20 = scalar_lea.sflag [#allocation4], %s105_s3 }
  0x36   : > { %s124_s11 = sshll.u32 %s107_s5, 4  ;;  %109 = vst [vmem:[%s107_s5] sm:$0x3] %v108_v0  ;;  %p493_p6 = scmp.ne.s32.totalorder %s486_s16, 0  ;;  %s436_s11 = int_to_ptr.vmem [resolvable:$true] %s124_s11 }
  0x37   : > { %s271_s21 = scalar_lea.vmem %s436_s11, 32  ;;  %s340_s22 = smov [#allocation5]  }
  0x38   : > { %p272_p5 = scmp.ne.s32.totalorder %s436_s11, %s271_s21  ;;  %s275_s10 = sshll.u32 %s340_s22, 4  ;;  %s276_s10 = int_to_ptr.vmem [resolvable:$false] %s275_s10 }
  0x39   : > { %s277_s23 = scalar_lea.vmem %s276_s10, 64  ;;  %p278_p12 = scmp.lt.s32.totalorder %s436_s11, %s276_s10 }
  0x3a   : > { %p273_p9 = pnand %p272_p5, %p493_p6  ;;  %p279_p2 = scmp.lt.s32.totalorder %s277_s23, %s271_s21 }
  0x3c   : > { %p274_p10 = pneg %p273_p9  ;;  %p280_p3 = por %p279_p2, %p278_p12 }
  0x3e   : > { %p281_p4 = pnand %p280_p3, %p274_p10 }
  0x40   : > { %284 = shalt.err (!%p281_p4)
}
  0x41   : > { %s285_s24 = scalar_lea.hbm %s441_s18, 32  ;;  %s289_s27 = scalar_lea.hbm %s482_s1, 64 }
  0x42   : > { %p286_p7 = scmp.ne.s32.totalorder %s441_s18, %s285_s24  ;;  %p290_p13 = scmp.lt.u32.totalorder %s441_s18, %s482_s1 }
  0x43   : > { %p291_p1 = scmp.lt.u32.totalorder %s289_s27, %s285_s24  ;;  %p293_p5 = scmp.lt.u32.totalorder %s285_s24, %s441_s18 }
  0x44   : > { %p287_p8 = pnand %p286_p7, %p493_p6 }
  0x45   : > { %p292_p0 = por %p291_p1, %p290_p13 }
  0x46   : > { %p288_p11 = pneg %p287_p8 }
  0x47   : > { %p294_p9 = por %p293_p5, %p292_p0 }
  0x49   : > { %p295_p10 = pnand %p294_p9, %p288_p11 }
  0x4b   : > { %298 = shalt.err (!%p295_p10)
}
  0x4c   : > { %197 = dma.vmem_to_hbm [thread:$0]  (%p493_p6), %s436_s11, 32, %s441_s18, %s111_s20  }
  0x4d PF: > { %p209_p12 = scmp.ge.s32.totalorder %s337_s9, 2  ;;  %s136_s30 = sand.u32 1, %s325_s6  }
  0x4e   : > { %p494_p2 = scmp.ne.s32.totalorder %s487_s17, 0  ;;  %s137_s2 = scalar_lea.sflag [#allocation4], %s136_s30 }
  0x50   : > { %p204_p3 = pnand %p209_p12, %p494_p2 }
  0x52   : > { %320 = dma.done.wait (!%p204_p3), %s137_s2, 32  }
  0x53   : > { %322 = vsyncadd (!%p204_p3), %s137_s2, 4294967264  ;;  %p12_p4 = scmp.ge.s32.totalorder %s376_s12, 4   ;;  %s495_s6 = smov %s329_s7 }
  0x54   : > { %s496_s7 = smov %s333_s8  ;;  %s497_s8 = smov %s387_s15 }
  0x55   : > { %s498_s9 = smov %s376_s12  ;;  %14 = sbr.rel (!%p12_p4) target bundleno = 4 (0x4), region = 61 }
  0x5c   :  { %142 = vsyncpa [#allocation3], 1 }
  0x5d   :  { %144 = vsyncpa [#allocation3 + $0x1], 1 }
  0x5e   :  { %145 = vsyncpa [#allocation4], 1 }
  0x5f   :  { %147 = vsyncpa [#allocation4 + $0x1], 1 }

</bundles_post_ra>
